<compile_context>
chip_gen: v7x
topology: tpu7x:2x2x1
jax: 0.10.0
libtpu: 0.0.40
codegen_flags: <defaults>
</compile_context>

<pallas_src>
import jax
import jax.numpy as jnp
from jax.experimental import pallas as pl
from jax.experimental.pallas import tpu as pltpu


def _dma_copy_kernel(x_ref, o_ref, sem):
    # x_ref / o_ref are raw HBM refs (memory_space=pl.ANY) of identical shape.
    # One whole-buffer HBM->HBM DMA: start it, then block until it lands.
    cp = pltpu.make_async_copy(x_ref, o_ref, sem)
    cp.start()
    cp.wait()


def _identity_copy_hbm(x: jax.Array) -> jax.Array:
    """Identity copy of `x` via a single HBM->HBM DMA inside a Pallas kernel."""
    n_bytes = x.size * jnp.dtype(x.dtype).itemsize
    return pl.pallas_call(
        _dma_copy_kernel,
        out_shape=jax.ShapeDtypeStruct(x.shape, x.dtype),
        in_specs=[pl.BlockSpec(memory_space=pl.ANY)],
        out_specs=pl.BlockSpec(memory_space=pl.ANY),
        scratch_shapes=[pltpu.SemaphoreType.DMA(())],
        cost_estimate=pl.CostEstimate(
            flops=0,
            transcendentals=0,
            bytes_accessed=2 * n_bytes,  # read n + write n
        ),
    )(x)


def reshape_pallas(x: jax.Array, h: int, w: int, *,
                   force_pallas_copy: bool = True) -> jax.Array:
    """Equivalent of Reshape(h, w).forward(x): x.view(x.shape[0], -1, h, w).

    force_pallas_copy=True routes the (otherwise free) reshape through a
    Pallas HBM->HBM DMA so this exercise actually runs a kernel.  In
    production set it to False: a row-major view is metadata-only and needs
    no HBM round trip at all.
    """
    b = x.shape[0]
    flat_len = 1
    for d in x.shape[1:]:
        flat_len *= d
    assert flat_len % (h * w) == 0, "total elements must be divisible by h*w"
    c_out = flat_len // (h * w)

    # Metadata-only, row-major reshape — identical semantics to torch .view().
    y = jnp.reshape(x, (b, c_out, h, w))

    if not force_pallas_copy:
        # TODO(synk): this is the production path; the kernel below exists
        # only because the exercise mandates a Pallas kernel.
        return y

    return _identity_copy_hbm(y)


if __name__ == "__main__":
    key = jax.random.PRNGKey(0)
    k0, k1 = jax.random.split(key)

    # Small NCHW input consistent with the module's usage.
    x = jax.random.normal(k0, (2, 4, 16, 16), dtype=jnp.float32)
    h, w = 8, 8  # Reshape(h=8, w=8): (2, 4, 16, 16) -> (2, 16, 8, 8)
    out = jax.block_until_ready(reshape_pallas(x, h, w))
    ref = jnp.reshape(x, (x.shape[0], -1, h, w))
    assert out.shape == (2, 16, 8, 8), out.shape
    assert out.dtype == x.dtype
    assert bool(jnp.all(out == ref)), "mismatch vs reference reshape (small)"

    # Larger input (8 MiB f32) to exercise the whole-buffer HBM->HBM DMA path.
    x_big = jax.random.normal(k1, (4, 128, 64, 64), dtype=jnp.float32)
    out_big = jax.block_until_ready(reshape_pallas(x_big, 64, 64))
    ref_big = jnp.reshape(x_big, (x_big.shape[0], -1, 64, 64))
    assert out_big.shape == ref_big.shape, out_big.shape
    assert bool(jnp.all(out_big == ref_big)), "mismatch vs reference (big)"

    # bf16 input: DMA path is dtype-agnostic (no sublane-packing concerns).
    x_bf16 = jax.random.normal(k1, (2, 8, 16, 16), dtype=jnp.bfloat16)
    out_bf16 = jax.block_until_ready(reshape_pallas(x_bf16, 4, 4))
    ref_bf16 = jnp.reshape(x_bf16, (x_bf16.shape[0], -1, 4, 4))
    assert out_bf16.shape == ref_bf16.shape and out_bf16.dtype == jnp.bfloat16
    assert bool(jnp.all(out_bf16 == ref_bf16)), "mismatch vs reference (bf16)"

    print("KERNEL_OK")
</pallas_src>

<mosaic_0001>
module attributes {stable_mosaic.version = 11 : i64} {
  func.func @_dma_copy_kernel(%arg0: memref<2x16x8x8xf32, #tpu.memory_space<any>>, %arg1: memref<2x16x8x8xf32, #tpu.memory_space<any>>, %arg2: memref<!tpu.dma_semaphore, #tpu.memory_space<semaphore_mem>>) attributes {dimension_semantics = [], scalar_prefetch = 0 : i64, scratch_operands = 1 : i64, tpu.core_type = #tpu.core_type<tc>} {
    tpu.enqueue_dma source(%arg0 : memref<2x16x8x8xf32, #tpu.memory_space<any>>) target(%arg1 : memref<2x16x8x8xf32, #tpu.memory_space<any>>) target_semaphore(%arg2 : memref<!tpu.dma_semaphore, #tpu.memory_space<semaphore_mem>>)
    tpu.wait_dma2 semaphore(%arg2 : memref<!tpu.dma_semaphore, #tpu.memory_space<semaphore_mem>>) src(%arg0 : memref<2x16x8x8xf32, #tpu.memory_space<any>>) dst(%arg1 : memref<2x16x8x8xf32, #tpu.memory_space<any>>)
    return
  }
}

</mosaic_0001>

<bundles_post_ra>
// kernel: tpu_custom_call.1
= control target key start
LH: loop header
LB: loop body
LE: loop exit
PB: predicated region body
PF: predicated region fallthrough
CT: control target
= control target key end

     0   :  { %s334_s0 = inlined_call_operand.vmem [shape: f32[2,16,8,8], index: 0, kind: input, shape index: {}]   ;;  %s335_s1 = inlined_call_operand.vmem [shape: f32[2,16,8,8], index: 1, kind: output, shape index: {}]  }
   0x1   :  { %v38_v0 = vld [vmem:[%s334_s0] sm:$0xff]  ;;  %v40_v1 = vld [vmem:[%s334_s0 + $0x8] sm:$0xff]  ;;  %v42_v2 = vld [vmem:[%s334_s0 + $0x10] sm:$0xff] }
   0x2   :  { %39 = vst [vmem:[%s335_s1] sm:$0xff] %v38_v0  ;;  %41 = vst [vmem:[%s335_s1 + $0x8] sm:$0xff] %v40_v1  ;;  %v44_v3 = vld [vmem:[%s334_s0 + $0x18] sm:$0xff]  ;;  %v46_v4 = vld [vmem:[%s334_s0 + $0x20] sm:$0xff] }
   0x3   :  { %43 = vst [vmem:[%s335_s1 + $0x10] sm:$0xff] %v42_v2  ;;  %v48_v5 = vld [vmem:[%s334_s0 + $0x28] sm:$0xff]  ;;  %45 = vst [vmem:[%s335_s1 + $0x18] sm:$0xff] %v44_v3  ;;  %v50_v6 = vld [vmem:[%s334_s0 + $0x30] sm:$0xff] }
   0x4   :  { %47 = vst [vmem:[%s335_s1 + $0x20] sm:$0xff] %v46_v4  ;;  %49 = vst [vmem:[%s335_s1 + $0x28] sm:$0xff] %v48_v5  ;;  %v52_v7 = vld [vmem:[%s334_s0 + $0x38] sm:$0xff]  ;;  %v54_v8 = vld [vmem:[%s334_s0 + $0x40] sm:$0xff] }
   0x5   :  { %51 = vst [vmem:[%s335_s1 + $0x30] sm:$0xff] %v50_v6  ;;  %53 = vst [vmem:[%s335_s1 + $0x38] sm:$0xff] %v52_v7  ;;  %v56_v9 = vld [vmem:[%s334_s0 + $0x48] sm:$0xff]  ;;  %v58_v10 = vld [vmem:[%s334_s0 + $0x50] sm:$0xff] }
   0x6   :  { %55 = vst [vmem:[%s335_s1 + $0x40] sm:$0xff] %v54_v8  ;;  %v60_v11 = vld [vmem:[%s334_s0 + $0x58] sm:$0xff]  ;;  %57 = vst [vmem:[%s335_s1 + $0x48] sm:$0xff] %v56_v9  ;;  %v62_v12 = vld [vmem:[%s334_s0 + $0x60] sm:$0xff] }
   0x7   :  { %59 = vst [vmem:[%s335_s1 + $0x50] sm:$0xff] %v58_v10  ;;  %61 = vst [vmem:[%s335_s1 + $0x58] sm:$0xff] %v60_v11  ;;  %v64_v13 = vld [vmem:[%s334_s0 + $0x68] sm:$0xff]  ;;  %v66_v14 = vld [vmem:[%s334_s0 + $0x70] sm:$0xff] }
   0x8   :  { %63 = vst [vmem:[%s335_s1 + $0x60] sm:$0xff] %v62_v12  ;;  %65 = vst [vmem:[%s335_s1 + $0x68] sm:$0xff] %v64_v13  ;;  %v68_v15 = vld [vmem:[%s334_s0 + $0x78] sm:$0xff]  ;;  %v70_v16 = vld [vmem:[%s334_s0 + $0x80] sm:$0xff] }
   0x9   :  { %67 = vst [vmem:[%s335_s1 + $0x70] sm:$0xff] %v66_v14  ;;  %v72_v17 = vld [vmem:[%s334_s0 + $0x88] sm:$0xff]  ;;  %69 = vst [vmem:[%s335_s1 + $0x78] sm:$0xff] %v68_v15  ;;  %v74_v18 = vld [vmem:[%s334_s0 + $0x90] sm:$0xff] }
   0xa   :  { %71 = vst [vmem:[%s335_s1 + $0x80] sm:$0xff] %v70_v16  ;;  %73 = vst [vmem:[%s335_s1 + $0x88] sm:$0xff] %v72_v17  ;;  %v76_v19 = vld [vmem:[%s334_s0 + $0x98] sm:$0xff]  ;;  %v78_v20 = vld [vmem:[%s334_s0 + $0xa0] sm:$0xff] }
   0xb   :  { %75 = vst [vmem:[%s335_s1 + $0x90] sm:$0xff] %v74_v18  ;;  %77 = vst [vmem:[%s335_s1 + $0x98] sm:$0xff] %v76_v19  ;;  %v80_v21 = vld [vmem:[%s334_s0 + $0xa8] sm:$0xff]  ;;  %v82_v22 = vld [vmem:[%s334_s0 + $0xb0] sm:$0xff] }
   0xc   :  { %79 = vst [vmem:[%s335_s1 + $0xa0] sm:$0xff] %v78_v20  ;;  %v84_v23 = vld [vmem:[%s334_s0 + $0xb8] sm:$0xff]  ;;  %81 = vst [vmem:[%s335_s1 + $0xa8] sm:$0xff] %v80_v21  ;;  %v86_v24 = vld [vmem:[%s334_s0 + $0xc0] sm:$0xff] }
   0xd   :  { %83 = vst [vmem:[%s335_s1 + $0xb0] sm:$0xff] %v82_v22  ;;  %85 = vst [vmem:[%s335_s1 + $0xb8] sm:$0xff] %v84_v23  ;;  %v88_v25 = vld [vmem:[%s334_s0 + $0xc8] sm:$0xff]  ;;  %v90_v26 = vld [vmem:[%s334_s0 + $0xd0] sm:$0xff] }
   0xe   :  { %87 = vst [vmem:[%s335_s1 + $0xc0] sm:$0xff] %v86_v24  ;;  %89 = vst [vmem:[%s335_s1 + $0xc8] sm:$0xff] %v88_v25  ;;  %v92_v27 = vld [vmem:[%s334_s0 + $0xd8] sm:$0xff]  ;;  %v94_v28 = vld [vmem:[%s334_s0 + $0xe0] sm:$0xff] }
   0xf   :  { %91 = vst [vmem:[%s335_s1 + $0xd0] sm:$0xff] %v90_v26  ;;  %v96_v29 = vld [vmem:[%s334_s0 + $0xe8] sm:$0xff]  ;;  %93 = vst [vmem:[%s335_s1 + $0xd8] sm:$0xff] %v92_v27  ;;  %v98_v30 = vld [vmem:[%s334_s0 + $0xf0] sm:$0xff] }
  0x10   :  { %95 = vst [vmem:[%s335_s1 + $0xe0] sm:$0xff] %v94_v28  ;;  %97 = vst [vmem:[%s335_s1 + $0xe8] sm:$0xff] %v96_v29  ;;  %v100_v31 = vld [vmem:[%s334_s0 + $0xf8] sm:$0xff] }
  0x11   :  { %99 = vst [vmem:[%s335_s1 + $0xf0] sm:$0xff] %v98_v30  ;;  %101 = vst [vmem:[%s335_s1 + $0xf8] sm:$0xff] %v100_v31 }
  0x12   :  { %109 = vsyncadd [#allocation2], 4096 }
  0x13   :  { %130 = dma.done.wait [#allocation2], 4096 }
  0x14   :  { %131 = vsyncadd [#allocation2], 4294963200 }
  0x15   :  { %115 = vsyncmov [#allocation2] }
  0x18   :  { %s116_s18 = vpop.sfrf %115 }
  0x19   :  { %p129_p0 = scmp.ne.s32.totalorder %s116_s18, 0 }
  0x1b   :  { %120 = shalt.err (%p129_p0)  }

</bundles_post_ra>
